<compile_context>
chip_gen: v7x
topology: tpu7x:2x2x1
jax: 0.10.0
libtpu: 0.0.40
codegen_flags: <defaults>
</compile_context>

<pallas_src>
import functools

import jax
import jax.numpy as jnp
from jax.experimental import pallas as pl
from jax.experimental.pallas import tpu as pltpu


def _focal_loss_kernel(alpha, gamma, n, tile_n, logits_ref, tgt_ref, psum_ref):
    """One batch tile: per-sample focal loss, reduced to a partial sum."""
    i = pl.program_id(0)

    logits = logits_ref[...].astype(jnp.float32)              # (TILE_N, C)
    tgt = tgt_ref[...]                                        # (TILE_N, 1) i32

    # Numerically-stable log-sum-exp over the class (lane) axis.
    m = jnp.max(logits, axis=-1, keepdims=True)               # (TILE_N, 1)
    lse = m + jnp.log(jnp.sum(jnp.exp(logits - m), axis=-1, keepdims=True))

    # Gather the target-class logit via a one-hot mask (no dynamic gather).
    col = jax.lax.broadcasted_iota(jnp.int32, logits.shape, 1)
    tgt_logit = jnp.sum(jnp.where(col == tgt, logits, 0.0),
                        axis=-1, keepdims=True)                # (TILE_N, 1)

    ce = lse - tgt_logit                                       # per-sample CE
    pt = jnp.exp(-ce)
    t = jnp.maximum(1.0 - pt, 0.0)                             # pow-safety clamp

    g = float(gamma)
    if g == int(g) and int(g) >= 0:
        # Integer power as repeated multiplies: stays on the VPU, keeps the
        # single EUP slot free for the two unavoidable exp()s.
        w = jnp.ones_like(t)
        for _ in range(int(g)):
            w = w * t
    else:
        w = t ** jnp.float32(g)

    focal = w * ce
    if float(alpha) != 1.0:
        focal = jnp.float32(alpha) * focal

    # Mask padded rows of the (possibly ragged) last tile.
    row = i * tile_n + jax.lax.broadcasted_iota(jnp.int32, focal.shape, 0)
    focal = jnp.where(row < n, focal, 0.0)

    # Partial sum for this tile, splat across the 128-lane output slot.
    s = jnp.sum(focal, keepdims=True)                          # (1, 1)
    psum_ref[...] = jnp.broadcast_to(s, (1, 128))


def _pick_tile_n(n, c):
    """Largest batch tile (multiple of 8) whose f32 logits slab is <= ~2 MiB."""
    rows = (2 * 1024 * 1024) // (4 * max(int(c), 1))
    rows = max(8, min(4096, (rows // 8) * 8))
    if rows >= n:
        return n                    # single full-extent block (always legal)
    return rows


def focal_loss(logits, targets, alpha=1.0, gamma=2.0, tile_n=None):
    """logits: (N, C) float; targets: (N,) int class indices -> scalar f32."""
    n, c = logits.shape
    targets2d = targets.astype(jnp.int32).reshape(n, 1)

    if tile_n is None:
        tile_n = _pick_tile_n(n, c)
    tile_n = int(tile_n)
    if tile_n >= n:
        tile_n = n                  # full-extent block: no sublane constraint
    elif tile_n % 8 != 0:
        raise ValueError("tile_n must be a multiple of 8 (or >= N)")

    num_tiles = int(pl.cdiv(n, tile_n))

    kernel = functools.partial(_focal_loss_kernel, float(alpha), float(gamma),
                               int(n), tile_n)

    partials = pl.pallas_call(
        kernel,
        out_shape=jax.ShapeDtypeStruct((1, num_tiles * 128), jnp.float32),
        grid_spec=pltpu.PrefetchScalarGridSpec(
            num_scalar_prefetch=0,
            grid=(num_tiles,),
            in_specs=[
                pl.BlockSpec((tile_n, c), lambda i: (i, 0)),   # logits tile
                pl.BlockSpec((tile_n, 1), lambda i: (i, 0)),   # targets tile
            ],
            out_specs=pl.BlockSpec((1, 128), lambda i: (0, i)),
        ),
        compiler_params=pltpu.CompilerParams(
            dimension_semantics=("parallel",)),
    )(logits, targets2d)

    # Tiny final reduction + mean scaling outside the kernel.
    per_tile = partials.reshape(num_tiles, 128)[:, 0]
    return jnp.sum(per_tile) * jnp.float32(1.0 / n)


def focal_loss_ref(logits, targets, alpha=1.0, gamma=2.0):
    """Pure-JAX reference mirroring torch.nn.functional.cross_entropy."""
    lse = jax.nn.logsumexp(logits, axis=-1)
    tgt_logit = jnp.take_along_axis(logits, targets[:, None], axis=-1)[:, 0]
    ce = lse - tgt_logit
    pt = jnp.exp(-ce)
    return jnp.mean(alpha * (1.0 - pt) ** gamma * ce)


if __name__ == "__main__":
    key = jax.random.PRNGKey(0)
    k1, k2, k3, k4 = jax.random.split(key, 4)

    # Case 1: ragged tiling (N=10 over TILE_N=8 -> masked last tile).
    N1, C1 = 10, 16
    logits1 = jax.random.normal(k1, (N1, C1), dtype=jnp.float32)
    targets1 = jax.random.randint(k2, (N1,), 0, C1, dtype=jnp.int32)
    out1 = jax.block_until_ready(
        focal_loss(logits1, targets1, alpha=1.0, gamma=2.0, tile_n=8))
    ref1 = focal_loss_ref(logits1, targets1, alpha=1.0, gamma=2.0)
    assert jnp.allclose(out1, ref1, rtol=1e-5, atol=1e-5), (out1, ref1)

    # Case 2: auto tile size (single full block), non-default alpha.
    N2, C2 = 32, 16
    logits2 = jax.random.normal(k3, (N2, C2), dtype=jnp.float32)
    targets2 = jax.random.randint(k4, (N2,), 0, C2, dtype=jnp.int32)
    out2 = jax.block_until_ready(
        focal_loss(logits2, targets2, alpha=0.25, gamma=2.0))
    ref2 = focal_loss_ref(logits2, targets2, alpha=0.25, gamma=2.0)
    assert jnp.allclose(out2, ref2, rtol=1e-5, atol=1e-5), (out2, ref2)

    print("KERNEL_OK")
</pallas_src>

<mosaic_0001>
module attributes {stable_mosaic.version = 11 : i64} {
  func.func @_focal_loss_kernel(%arg0: i32, %arg1: memref<8x16xf32, #tpu.memory_space<vmem>>, %arg2: memref<8x1xi32, #tpu.memory_space<vmem>>, %arg3: memref<1x128xf32, #tpu.memory_space<vmem>>) attributes {dimension_semantics = [#tpu.dimension_semantics<parallel>], iteration_bounds = array<i64: 2>, scalar_prefetch = 0 : i64, scratch_operands = 0 : i64, tpu.core_type = #tpu.core_type<tc>, window_params = [{transform_indices = @transform_0, window_bounds = array<i64: 8, 16>}, {transform_indices = @transform_1, window_bounds = array<i64: 8, 1>}, {transform_indices = @transform_2, window_bounds = array<i64: 1, 128>}]} {
    %c0 = arith.constant 0 : index
    %c0_0 = arith.constant 0 : index
    %0 = vector.load %arg1[%c0, %c0_0] : memref<8x16xf32, #tpu.memory_space<vmem>>, vector<8x16xf32>
    %c0_1 = arith.constant 0 : index
    %c0_2 = arith.constant 0 : index
    %1 = vector.load %arg2[%c0_1, %c0_2] : memref<8x1xi32, #tpu.memory_space<vmem>>, vector<8x1xi32>
    %cst = arith.constant dense<0xFF800000> : vector<8xf32>
    %2 = vector.multi_reduction <maximumf>, %0, %cst [1] : vector<8x16xf32> to vector<8xf32>
    %3 = vector.shape_cast %2 : vector<8xf32> to vector<8x1xf32>
    %4 = vector.broadcast %3 : vector<8x1xf32> to vector<8x16xf32>
    %5 = arith.subf %0, %4 : vector<8x16xf32>
    %6 = math.exp %5 : vector<8x16xf32>
    %cst_3 = arith.constant dense<0.000000e+00> : vector<8xf32>
    %7 = vector.multi_reduction <add>, %6, %cst_3 [1] : vector<8x16xf32> to vector<8xf32>
    %8 = vector.shape_cast %7 : vector<8xf32> to vector<8x1xf32>
    %9 = math.log %8 : vector<8x1xf32>
    %10 = arith.addf %3, %9 : vector<8x1xf32>
    %11 = tpu.iota {dimensions = array<i32: 1>} : vector<8x16xi32>
    %12 = vector.broadcast %1 : vector<8x1xi32> to vector<8x16xi32>
    %13 = arith.cmpi eq, %11, %12 : vector<8x16xi32>
    %cst_4 = arith.constant 0.000000e+00 : f32
    %14 = vector.broadcast %cst_4 : f32 to vector<8x16xf32>
    %15 = arith.select %13, %0, %14 : vector<8x16xi1>, vector<8x16xf32>
    %cst_5 = arith.constant dense<0.000000e+00> : vector<8xf32>
    %16 = vector.multi_reduction <add>, %15, %cst_5 [1] : vector<8x16xf32> to vector<8xf32>
    %17 = vector.shape_cast %16 : vector<8xf32> to vector<8x1xf32>
    %18 = arith.subf %10, %17 : vector<8x1xf32>
    %cst_6 = arith.constant 0.000000e+00 : f32
    %19 = vector.broadcast %cst_6 : f32 to vector<8x1xf32>
    %20 = arith.subf %19, %18 : vector<8x1xf32>
    %21 = math.exp %20 : vector<8x1xf32>
    %cst_7 = arith.constant 1.000000e+00 : f32
    %22 = vector.broadcast %cst_7 : f32 to vector<8x1xf32>
    %23 = arith.subf %22, %21 : vector<8x1xf32>
    %cst_8 = arith.constant 0.000000e+00 : f32
    %24 = vector.broadcast %cst_8 : f32 to vector<8x1xf32>
    %25 = arith.maximumf %23, %24 : vector<8x1xf32>
    %cst_9 = arith.constant 1.000000e+00 : f32
    %26 = vector.broadcast %cst_9 : f32 to vector<8x1xf32>
    %27 = arith.mulf %26, %25 : vector<8x1xf32>
    %28 = arith.mulf %27, %25 : vector<8x1xf32>
    %29 = arith.mulf %28, %18 : vector<8x1xf32>
    %c8_i32 = arith.constant 8 : i32
    %30 = arith.muli %arg0, %c8_i32 : i32
    %31 = tpu.iota {dimensions = array<i32: 0>} : vector<8x1xi32>
    %32 = vector.broadcast %30 : i32 to vector<8x1xi32>
    %33 = arith.addi %32, %31 : vector<8x1xi32>
    %c10_i32 = arith.constant 10 : i32
    %34 = vector.broadcast %c10_i32 : i32 to vector<8x1xi32>
    %35 = arith.cmpi slt, %33, %34 : vector<8x1xi32>
    %cst_10 = arith.constant 0.000000e+00 : f32
    %36 = vector.broadcast %cst_10 : f32 to vector<8x1xf32>
    %37 = arith.select %35, %29, %36 : vector<8x1xi1>, vector<8x1xf32>
    %38 = vector.shape_cast %37 : vector<8x1xf32> to vector<1x8x1xf32>
    %cst_11 = arith.constant dense<0.000000e+00> : vector<1xf32>
    %39 = vector.multi_reduction <add>, %38, %cst_11 [1, 2] : vector<1x8x1xf32> to vector<1xf32>
    %40 = vector.shape_cast %39 : vector<1xf32> to vector<1x1x1xf32>
    %41 = vector.extract %40[0, 0, 0] : f32 from vector<1x1x1xf32>
    %42 = vector.broadcast %41 : f32 to vector<1x1xf32>
    %43 = vector.shape_cast %42 : vector<1x1xf32> to vector<1x1xf32>
    %44 = vector.broadcast %43 : vector<1x1xf32> to vector<1x128xf32>
    %c0_12 = arith.constant 0 : index
    %c0_13 = arith.constant 0 : index
    %45 = vector.load %arg3[%c0_12, %c0_13] : memref<1x128xf32, #tpu.memory_space<vmem>>, vector<1x128xf32>
    tpu.vector_store %arg3[%c0_12, %c0_13], %44 {strides = array<i32>} : memref<1x128xf32, #tpu.memory_space<vmem>>, vector<1x128xf32>,
    return
  }
  func.func @transform_0(%arg0: i32) -> (i32, i32) {
    %c0_i32 = arith.constant 0 : i32
    %c0_i32_0 = arith.constant 0 : i32
    return %arg0, %c0_i32 : i32, i32
  }
  func.func @transform_1(%arg0: i32) -> (i32, i32) {
    %c0_i32 = arith.constant 0 : i32
    %c0_i32_0 = arith.constant 0 : i32
    return %arg0, %c0_i32 : i32, i32
  }
  func.func @transform_2(%arg0: i32) -> (i32, i32) {
    %c0_i32 = arith.constant 0 : i32
    %c0_i32_0 = arith.constant 0 : i32
    return %c0_i32, %arg0 : i32, i32
  }
}

</mosaic_0001>

<bundles_post_ra>
// kernel: tpu_custom_call.1
= control target key start
LH: loop header
LB: loop body
LE: loop exit
PB: predicated region body
PF: predicated region fallthrough
CT: control target
= control target key end

     0   :  { %7 = vsyncpa [#allocation3], 0  ;;  %s535_s0 = inlined_call_operand.vmem [shape: f32[10,16], index: 0, kind: input, shape index: {}]   ;;  %s536_s1 = inlined_call_operand.vmem [shape: s32[10,1], index: 1, kind: input, shape index: {}]   ;;  %s537_s2 = inlined_call_operand.hbm [shape: f32[1,256], index: 2, kind: output, shape index: {}]  }
   0x1   :  { %9 = vsyncpa [#allocation3 + $0x1], 0  ;;  %s428_s9 = smov 0   ;;  %s430_s10 = smov 0  }
   0x2   :  { %s432_s11 = smov 0   ;;  %s434_s12 = smov 0  }
   0x3 LB: > { %s449_s13 = sadd.s32 4294967295, %s409_s12   ;;  %s288_s14 = sadd.s32 4294967294, %s409_s12   ;;  %s409_s12 = sphi %s434_s12, %s543_s12   ;;  %s405_s11 = sphi %s432_s11, %s542_s11   ;;  %s401_s10 = sphi %s430_s10, %s541_s10   ;;  %s397_s9 = sphi %s428_s9, %s540_s9  }
   0x4   : > { %s453_s15 = sadd.s32 1, %s409_s12   ;;  %s74_s16 = sadd.s32 1, %s405_s11 }
   0x5   : > { %s71_s17 = ssub.s32 %s409_s12, %s453_s15  ;;  %p84_p0 = scmp.ne.s32.totalorder %s405_s11, %s401_s10 }
   0x6   : > { %p72_p1 = scmp.eq.s32.totalorder %s71_s17, 0  ;;  %p85_p2 = scmp.eq.s32.totalorder %s449_s13, 1 }
   0x7   : > { %p90_p3 = scmp.ne.s32.totalorder %s401_s10, %s397_s9  ;;  %p91_p4 = scmp.eq.s32.totalorder %s288_s14, 1 }
   0x8   : > { %s464_s18 = scalar_select %p72_p1, %s405_s11, %s74_s16  }
   0x9   : > { %p466_p5 = por %p85_p2, %p84_p0  ;;  %p470_p6 = por %p91_p4, %p90_p3 }
   0xa   : > { %p291_p7 = scmp.ge.s32.totalorder %s409_s12, 1  ;;  %p123_p8 = scmp.lt.s32.totalorder %s409_s12, 3 }
   0xc   : > { %p124_p9 = pnand %p291_p7, %p123_p8 }
   0xd   : > { %p147_p10 = scmp.lt.s32.totalorder (!%p124_p9), %s449_s13, 1  ;;  %v411_v0 = vmov (!%p124_p9), 0   ;;  %vm157_vm0 = vcmask (!%p124_p9), 130048   ;;  %v170_v7 = vlaneseq (!%p124_p9)  ;;  %s294_s29 = sshll.u32 (!%p124_p9), %s449_s13, 3  ;;  %vm195_vm3 = vcmask (!%p124_p9), 7168  }
   0xe   : > { %127 = sbr.rel (%p124_p9) target bundleno = 588 (0x24c), region = 28  ;;  %340 = vset.pattern.permute.xlu0 (!%p124_p9), %v411_v0  ;;  %v191_v23 = vstv (!%p124_p9), %s294_s29  ;;  %s145_s30 = sand.u32 (!%p124_p9), 1, %s401_s10  }
   0xf   : > { %v171_v8 = vand.u32 (!%p124_p9), 127, %v170_v7  ;;  %v190_v22 = vshrl.u32 (!%p124_p9), %v170_v7, 7  ;;  %s146_s3 = scalar_lea.vmem (!%p124_p9), [#allocation2], %s145_s30  ;;  %s295_s5 = sshll.u32 (!%p124_p9), %s449_s13, 4 }
  0x10   : > { %s221_s4 = sshll.u32 (!%p124_p9), %s146_s3, 4  ;;  %s495_s14 = scalar_lea.hbm (!%p124_p9), %s537_s2, %s295_s5  ;;  %s490_s4 = int_to_ptr.vmem [resolvable:$true] %s221_s4 }
  0x11   : > { %v192_v26 = vadd.s32 (!%p124_p9), %v191_v23, %v190_v22  ;;  %s209_s16 = scalar_lea.sflag (!%p124_p9), [#allocation3], %s145_s30  ;;  %s347_s17 = scalar_lea.vmem (!%p124_p9), %s490_s4, 16 }
  0x12   : > { %p348_p11 = scmp.ne.s32.totalorder (!%p124_p9), %s490_s4, %s347_s17 }
  0x13   : > { %vm193_vm2 = vcmp.lt.s32.totalorder (!%p124_p9), %v192_v26, 10 }
  0x14   : > { %p349_p12 = pnand (!%p124_p9), %p348_p11, %p466_p5 }
  0x15   : > { %s148_s21 = scalar_select %p147_p10, %s449_s13, 1 }
  0x16   : > { %p350_p13 = pneg %p349_p12  ;;  %s412_s13 = smov [#allocation2]  }
  0x17   : > { %s292_s22 = sshll.u32 %s148_s21, 3  ;;  %s351_s21 = sshll.u32 %s412_s13, 4  ;;  %s352_s21 = int_to_ptr.vmem [resolvable:$false] %s351_s21 }
  0x18   : > { %s150_s25 = scalar_lea.vmem %s535_s0, %s292_s22  ;;  %s154_s28 = scalar_lea.vmem %s536_s1, %s292_s22 }
  0x19   : > { %v155_v1 = vld [vmem:[%s150_s25] sm:$0xff]  ;;  %s353_s22 = scalar_lea.vmem %s352_s21, 32  ;;  %p354_p0 = scmp.lt.s32.totalorder %s490_s4, %s352_s21 }
  0x1a   : > { %v158_v2 = vsel %vm157_vm0, %v155_v1, -inf  ;;  %v156_v3 = vld [vmem:[%s154_s28] sm:$0xff]  ;;  %p355_p1 = scmp.lt.s32.totalorder %s353_s22, %s347_s17 }
  0x1b   : > { %159 = vmax.xlane.f32.xlu0 %v158_v2 }
  0x1c   : > { %p356_p2 = por %p355_p1, %p354_p0 }
  0x1e   : > { %p357_p3 = pnand %p356_p2, %p350_p13 }
  0x31   : > { %173 = vperm.xlu0 %340, %v156_v3  }
  0xa8   : > { %v160_v4 = vpop.xlane.xlu0 %159 }
  0xa9   : > { %v161_v5 = vsub.f32 %v155_v1, %v160_v4 }
  0xab   : > { %v162_v6 = vmul.f32 1.442695, %v161_v5 }
  0xad   : > { %341 = vpow2.f32 %v162_v6 }
  0xb0   : > { %v174_v9 = vpop.permute.xlu0 %173 }
  0xb1   : > { %vm175_vm1 = vcmp.eq.s32.totalorder %v171_v8, %v174_v9 }
  0xb2   : > { %v176_v11 = vsel %vm175_vm1, %v155_v1, 0.0 }
  0xb3   : > { %v177_v13 = vsel %vm157_vm0, %v176_v11, 0.0 }
  0xb7   : > { %v342_v10 = vpop.eup %341 }
  0xb8   : > { %v164_v12 = vsel %vm157_vm0, %v342_v10, 0.0 }
  0xb9   : > { %165 = vadd.xlane.f32.xlu1 %v164_v12 }
  0xbd   : > { %178 = vadd.xlane.f32.xlu1 %v177_v13 }
 0x146   : > { %v166_v14 = vpop.xlane.xlu1 %165 }
 0x147   : > { %343 = vlog2.f32 %v166_v14 }
 0x14a   : > { %v179_v17 = vpop.xlane.xlu1 %178 }
 0x151   : > { %v344_v15 = vpop.eup %343 }
 0x152   : > { %v168_v16 = vmul.f32 0.6931472, %v344_v15 }
 0x154   : > { %v169_v18 = vadd.f32 %v168_v16, %v160_v4 }
 0x156   : > { %v180_v19 = vsub.f32 %v169_v18, %v179_v17 }
 0x158   : > { %v181_v20 = vsub.f32 0.0, %v180_v19 }
 0x15a   : > { %v182_v21 = vmul.f32 1.442695, %v181_v20 }
 0x15c   : > { %345 = vpow2.f32 %v182_v21 }
 0x166   : > { %v346_v24 = vpop.eup %345 }
 0x167   : > { %v184_v25 = vsub.f32 1.0, %v346_v24 }
 0x169   : > { %v185_v27 = vmax.f32 %v184_v25, 0.0 }
 0x16b   : > { %v186_v28 = vmul.f32 %v185_v27, %v185_v27 }
 0x16d   : > { %v187_v29 = vmul.f32 %v186_v28, %v180_v19 }
 0x16f   : > { %v194_v30 = vsel %vm193_vm2, %v187_v29, 0.0 }
 0x170   : > { %v196_v31 = vsel %vm195_vm3, %v194_v30, 0.0 }
 0x171   : > { %197 = vadd.xlane.f32.xlu1 %v196_v31 }
 0x1fe   : > { %v198_v32 = vpop.xlane.xlu1 %197 }
 0x1ff   : > { %v199_v33 = vrot.slane %v198_v32, 4 }
 0x201   : > { %v200_v34 = vadd.f32 %v199_v33, %v198_v32 }
 0x203   : > { %v201_v35 = vrot.slane %v200_v34, 2 }
 0x205   : > { %v202_v36 = vadd.f32 %v201_v35, %v200_v34 }
 0x207   : > { %v203_v37 = vrot.slane %v202_v36, 1 }
 0x209   : > { %v204_v38 = vadd.f32 %v203_v37, %v202_v36 }
 0x20b   : > { %298 = vpush %v204_v38 }
 0x23c   : > { %s299_s6 = spop %298 }
 0x23d   : > { %v206_v39 = vstv %s299_s6 }
 0x23e   : > { %207 = vst [vmem:[%s146_s3] sm:$0x1] %v206_v39 }
 0x23f   : > { %360 = shalt.err (!%p357_p3)
}
 0x240   : > { %s361_s23 = scalar_lea.hbm %s495_s14, 16  ;;  %s365_s26 = scalar_lea.hbm %s537_s2, 32 }
 0x241   : > { %p362_p4 = scmp.ne.s32.totalorder %s495_s14, %s361_s23  ;;  %p366_p9 = scmp.lt.u32.totalorder %s495_s14, %s537_s2 }
 0x242   : > { %p367_p10 = scmp.lt.u32.totalorder %s365_s26, %s361_s23  ;;  %p369_p12 = scmp.lt.u32.totalorder %s361_s23, %s495_s14 }
 0x243   : > { %p363_p7 = pnand %p362_p4, %p466_p5 }
 0x244   : > { %p368_p11 = por %p367_p10, %p366_p9 }
 0x245   : > { %p364_p8 = pneg %p363_p7 }
 0x246   : > { %p370_p13 = por %p369_p12, %p368_p11 }
 0x248   : > { %p371_p0 = pnand %p370_p13, %p364_p8 }
 0x24a   : > { %374 = shalt.err (!%p371_p0)
}
 0x24b   : > { %300 = dma.vmem_to_hbm [thread:$0]  (%p466_p5), %s490_s4, 16, %s495_s14, %s209_s16  }
 0x24c PF: > { %p306_p1 = scmp.ge.s32.totalorder %s409_s12, 2  ;;  %s233_s29 = sand.u32 1, %s397_s9  }
 0x24d   : > { %s234_s30 = scalar_lea.sflag [#allocation3], %s233_s29 }
 0x24e   : > { %p303_p2 = pnand %p306_p1, %p470_p6 }
 0x250   : > { %392 = dma.done.wait (!%p303_p2), %s234_s30, 16  }
 0x251   : > { %394 = vsyncadd (!%p303_p2), %s234_s30, 4294967280  ;;  %p12_p3 = scmp.ge.s32.totalorder %s453_s15, 4   ;;  %s540_s9 = smov %s401_s10 }
 0x252   : > { %s541_s10 = smov %s405_s11  ;;  %s542_s11 = smov %s464_s18 }
 0x253   : > { %s543_s12 = smov %s453_s15  ;;  %14 = sbr.rel (!%p12_p3) target bundleno = 3 (0x3), region = 66 }
 0x25a   :  { %238 = vsyncpa [#allocation3], 1 }
 0x25b   :  { %240 = vsyncpa [#allocation3 + $0x1], 1 }

</bundles_post_ra>
